<compile_context>
chip_gen: v7x
topology: tpu7x:2x2x1
jax: 0.10.0
libtpu: 0.0.40
codegen_flags: <defaults>
</compile_context>

<pallas_src>
import math

import jax
import jax.numpy as jnp
from jax import lax
from jax.experimental import pallas as pl
from jax.experimental.pallas import tpu as pltpu


def _round_up(x: int, m: int) -> int:
    return ((x + m - 1) // m) * m


def _physical_vmem_bytes() -> int:
    """Per-core physical VMEM; conservative fallback if the query is unavailable."""
    try:
        info = pltpu.get_tpu_info()
        for name in ("vmem_capacity_bytes", "vmem_size_bytes", "vmem_bytes"):
            v = getattr(info, name, None)
            if v:
                return int(v)
    except Exception:
        pass
    return 64 * 1024 * 1024  # v7x per-TC physical VMEM (smallest across generations)


def _gelu_erf_f32(h):
    # Exact erf-based GELU (nn.GELU default), computed in f32.
    return 0.5 * h * (1.0 + lax.erf(h * (1.0 / math.sqrt(2.0))))


# ---------------------------------------------------------------------------
# Kernel bodies
# ---------------------------------------------------------------------------
def _mlp_kernel_resident(x_ref, w1_ref, b1_ref, w2_ref, b2_ref, o_ref):
    """Weights fully VMEM-resident; single shot per M tile. Grid: (M tiles,)."""
    h = jnp.dot(x_ref[...], w1_ref[...], preferred_element_type=jnp.float32)
    h = h + b1_ref[...].astype(jnp.float32)
    h = _gelu_erf_f32(h)
    o = jnp.dot(h.astype(w2_ref.dtype), w2_ref[...],
                preferred_element_type=jnp.float32)
    o = o + b2_ref[...].astype(jnp.float32)
    o_ref[...] = o.astype(o_ref.dtype)


def _mlp_kernel_streamed(x_ref, w1_ref, b1_ref, w2_ref, b2_ref, o_ref, acc_ref):
    """H streamed as a reduction axis. Grid: (M tiles ["parallel"], H tiles ["arbitrary"])."""
    h_idx = pl.program_id(1)

    h = jnp.dot(x_ref[...], w1_ref[...], preferred_element_type=jnp.float32)
    h = h + b1_ref[...].astype(jnp.float32)
    h = _gelu_erf_f32(h)
    partial = jnp.dot(h.astype(w2_ref.dtype), w2_ref[...],
                      preferred_element_type=jnp.float32)

    @pl.when(h_idx == 0)
    def _():
        # Fold the fc2 bias into the first partial sum (no separate seed pass).
        acc_ref[...] = partial + b2_ref[...].astype(jnp.float32)

    @pl.when(h_idx > 0)
    def _():
        acc_ref[...] += partial

    @pl.when(h_idx == pl.num_programs(1) - 1)
    def _():
        o_ref[...] = acc_ref[...].astype(o_ref.dtype)


# ---------------------------------------------------------------------------
# Wrapper
# ---------------------------------------------------------------------------
def mlp_pallas(x, w1, b1, w2, b2, *, tile_m=None, tile_h=None,
               compute_dtype=jnp.bfloat16, mode="auto"):
    """ViT MLP forward.

    x: (B, N, Cin); w1: (Cin, H); b1: (H,); w2: (H, Cout); b2: (Cout,)
    mode: "auto" | "resident" | "streamed"
    """
    assert mode in ("auto", "resident", "streamed")
    B, N, Cin = x.shape
    H = w1.shape[1]
    Cout = w2.shape[1]
    M = B * N
    out_dtype = x.dtype

    cb = jnp.dtype(compute_dtype).itemsize
    ob = jnp.dtype(out_dtype).itemsize

    Cin_p = _round_up(Cin, 128)      # lane-dense x loads / matmul K dim
    Cout_p = _round_up(Cout, 128)    # lane-dense output stores
    H_p = _round_up(H, 128)

    vmem_phys = _physical_vmem_bytes()
    vmem_budget = int(vmem_phys * 0.75)   # headroom for compiler scratch (v7x: 64 MiB physical)

    # ---------------- resident-weights plan ----------------
    tm_res = tile_m if tile_m is not None else 256
    tm_res = max(8, _round_up(min(tm_res, _round_up(M, 256)), 8))

    def est_resident(tm):
        return (2 * tm * Cin_p * cb                       # x tile (double-buffered)
                + 2 * tm * Cout_p * ob                    # out tile (double-buffered)
                + 2 * (Cin_p * H_p + H_p * Cout_p) * cb   # W1 + W2 (assume 2 buffers)
                + 2 * (H_p + Cout_p) * 4                  # biases (f32)
                + tm * H_p * (4 + cb)                     # hidden f32 + bf16 cast
                + tm * Cout_p * 4)                        # f32 result before cast

    use_resident = (mode == "resident") or (
        mode == "auto" and est_resident(tm_res) <= vmem_budget)

    if use_resident:
        tm = tm_res
        M_p = _round_up(M, tm)

        x2 = jnp.pad(x.reshape(M, Cin).astype(compute_dtype),
                     ((0, M_p - M), (0, Cin_p - Cin)))
        w1p = jnp.pad(w1.astype(compute_dtype), ((0, Cin_p - Cin), (0, H_p - H)))
        w2p = jnp.pad(w2.astype(compute_dtype), ((0, H_p - H), (0, Cout_p - Cout)))
        b1p = jnp.pad(b1.astype(jnp.float32), (0, H_p - H)).reshape(1, H_p)
        b2p = jnp.pad(b2.astype(jnp.float32), (0, Cout_p - Cout)).reshape(1, Cout_p)

        est = est_resident(tm)
        vmem_limit = min(max(int(est * 1.5), 32 * 1024 * 1024), vmem_budget)

        out = pl.pallas_call(
            _mlp_kernel_resident,
            out_shape=jax.ShapeDtypeStruct((M_p, Cout_p), out_dtype),
            grid_spec=pltpu.PrefetchScalarGridSpec(
                num_scalar_prefetch=0,
                grid=(M_p // tm,),
                in_specs=[
                    pl.BlockSpec((tm, Cin_p), lambda i: (i, 0)),
                    # Constant index maps -> weights/biases DMA'd once, stay resident.
                    pl.BlockSpec((Cin_p, H_p), lambda i: (0, 0)),
                    pl.BlockSpec((1, H_p), lambda i: (0, 0)),
                    pl.BlockSpec((H_p, Cout_p), lambda i: (0, 0)),
                    pl.BlockSpec((1, Cout_p), lambda i: (0, 0)),
                ],
                out_specs=pl.BlockSpec((tm, Cout_p), lambda i: (i, 0)),
            ),
            compiler_params=pltpu.CompilerParams(
                dimension_semantics=("parallel",),
                vmem_limit_bytes=vmem_limit,
            ),
        )(x2, w1p, b1p, w2p, b2p)

        return out[:M, :Cout].reshape(B, N, Cout)

    # ---------------- streamed-weights plan ----------------
    tm = tile_m if tile_m is not None else 1024
    tm = max(8, _round_up(min(tm, _round_up(M, 256)), 8))
    th = tile_h if tile_h is not None else 2048
    th = max(128, _round_up(min(th, _round_up(H, 128)), 128))

    def est_streamed(tm_, th_):
        return (2 * (tm_ * Cin_p * cb            # x tile
                     + Cin_p * th_ * cb          # W1 chunk
                     + th_ * 4                   # b1 chunk (f32)
                     + th_ * Cout_p * cb         # W2 chunk
                     + Cout_p * 4                # b2 (f32)
                     + tm_ * Cout_p * ob)        # out tile
                + tm_ * Cout_p * 4               # accumulator
                + tm_ * th_ * (4 + cb))          # hidden f32 + bf16 cast

    # Shrink tiles (tile_h first, then tile_m) until the plan fits the VMEM budget.
    while est_streamed(tm, th) > vmem_budget:
        if th > 512:
            th = max(128, _round_up(th // 2, 128))
        elif tm > 256:
            tm = max(8, _round_up(tm // 2, 8))
        elif th > 128:
            th = max(128, _round_up(th // 2, 128))
        elif tm > 8:
            tm = max(8, _round_up(tm // 2, 8))
        else:
            break

    M_p = _round_up(M, tm)
    H_pp = _round_up(H, th)

    x2 = jnp.pad(x.reshape(M, Cin).astype(compute_dtype),
                 ((0, M_p - M), (0, Cin_p - Cin)))
    w1p = jnp.pad(w1.astype(compute_dtype), ((0, Cin_p - Cin), (0, H_pp - H)))
    w2p = jnp.pad(w2.astype(compute_dtype), ((0, H_pp - H), (0, Cout_p - Cout)))
    b1p = jnp.pad(b1.astype(jnp.float32), (0, H_pp - H)).reshape(1, H_pp)
    b2p = jnp.pad(b2.astype(jnp.float32), (0, Cout_p - Cout)).reshape(1, Cout_p)

    est = est_streamed(tm, th)
    vmem_limit = min(max(int(est * 1.5), 32 * 1024 * 1024), vmem_budget)

    out = pl.pallas_call(
        _mlp_kernel_streamed,
        out_shape=jax.ShapeDtypeStruct((M_p, Cout_p), out_dtype),
        grid_spec=pltpu.PrefetchScalarGridSpec(
            num_scalar_prefetch=0,
            grid=(M_p // tm, H_pp // th),
            in_specs=[
                pl.BlockSpec((tm, Cin_p), lambda i, h: (i, 0)),
                pl.BlockSpec((Cin_p, th), lambda i, h: (0, h)),
                pl.BlockSpec((1, th), lambda i, h: (0, h)),
                pl.BlockSpec((th, Cout_p), lambda i, h: (h, 0)),
                pl.BlockSpec((1, Cout_p), lambda i, h: (0, 0)),
            ],
            out_specs=pl.BlockSpec((tm, Cout_p), lambda i, h: (i, 0)),
            scratch_shapes=[pltpu.VMEM((tm, Cout_p), jnp.float32)],
        ),
        compiler_params=pltpu.CompilerParams(
            dimension_semantics=("parallel", "arbitrary"),
            vmem_limit_bytes=vmem_limit,
        ),
    )(x2, w1p, b1p, w2p, b2p)

    return out[:M, :Cout].reshape(B, N, Cout)


# ---------------------------------------------------------------------------
# Reference (same cast discipline: bf16 operands, f32 accumulation)
# ---------------------------------------------------------------------------
def mlp_reference(x, w1, b1, w2, b2, compute_dtype=jnp.bfloat16):
    xc = x.astype(compute_dtype)
    h = jnp.dot(xc, w1.astype(compute_dtype),
                preferred_element_type=jnp.float32) + b1.astype(jnp.float32)
    h = _gelu_erf_f32(h)
    o = jnp.dot(h.astype(compute_dtype), w2.astype(compute_dtype),
                preferred_element_type=jnp.float32) + b2.astype(jnp.float32)
    return o.astype(x.dtype)


def _make_params(key, cin, hid, cout):
    k1, kb1, k2, kb2 = jax.random.split(key, 4)
    bound1 = 1.0 / math.sqrt(cin)
    bound2 = 1.0 / math.sqrt(hid)
    # PyTorch nn.Linear-style uniform init; weights stored pre-transposed as
    # (Cin, H) and (H, Cout) so the kernel computes x @ W.
    w1 = jax.random.uniform(k1, (cin, hid), minval=-bound1, maxval=bound1,
                            dtype=jnp.float32)
    b1 = jax.random.uniform(kb1, (hid,), minval=-bound1, maxval=bound1,
                            dtype=jnp.float32)
    w2 = jax.random.uniform(k2, (hid, cout), minval=-bound2, maxval=bound2,
                            dtype=jnp.float32)
    b2 = jax.random.uniform(kb2, (cout,), minval=-bound2, maxval=bound2,
                            dtype=jnp.float32)
    return w1, b1, w2, b2


if __name__ == "__main__":
    key = jax.random.PRNGKey(0)

    # --- Test 1: small ViT-ish shapes, auto mode (weights VMEM-resident path) ---
    B, N, Cin, Hid, Cout = 2, 8, 32, 64, 32
    kx, kp, kx2, kp2 = jax.random.split(key, 4)
    w1, b1, w2, b2 = _make_params(kp, Cin, Hid, Cout)
    x = jax.random.normal(kx, (B, N, Cin), dtype=jnp.float32)

    out = jax.block_until_ready(mlp_pallas(x, w1, b1, w2, b2))
    ref = mlp_reference(x, w1, b1, w2, b2)
    assert out.shape == (B, N, Cout)
    assert jnp.allclose(out, ref, atol=2e-3, rtol=2e-3), "resident-path mismatch"

    # --- Test 2: force the streamed (H-reduction) path with multi-step grid ---
    B2, N2, Cin2, Hid2, Cout2 = 2, 128, 48, 256, 40
    w1s, b1s, w2s, b2s = _make_params(kp2, Cin2, Hid2, Cout2)
    xs = jax.random.normal(kx2, (B2, N2, Cin2), dtype=jnp.float32)

    out_s = jax.block_until_ready(
        mlp_pallas(xs, w1s, b1s, w2s, b2s, tile_m=128, tile_h=128,
                   mode="streamed"))
    ref_s = mlp_reference(xs, w1s, b1s, w2s, b2s)
    assert out_s.shape == (B2, N2, Cout2)
    assert jnp.allclose(out_s, ref_s, atol=2e-3, rtol=2e-3), "streamed-path mismatch"

    print("KERNEL_OK")
</pallas_src>

<mosaic_0001>
module attributes {stable_mosaic.version = 11 : i64} {
  func.func @_mlp_kernel_resident(%arg0: i32, %arg1: memref<256x128xbf16, #tpu.memory_space<vmem>>, %arg2: memref<128x128xbf16, #tpu.memory_space<vmem>>, %arg3: memref<1x128xf32, #tpu.memory_space<vmem>>, %arg4: memref<128x128xbf16, #tpu.memory_space<vmem>>, %arg5: memref<1x128xf32, #tpu.memory_space<vmem>>, %arg6: memref<256x128xf32, #tpu.memory_space<vmem>>) attributes {dimension_semantics = [#tpu.dimension_semantics<parallel>], iteration_bounds = array<i64: 1>, scalar_prefetch = 0 : i64, scratch_operands = 0 : i64, tpu.core_type = #tpu.core_type<tc>, window_params = [{transform_indices = @transform_0, window_bounds = array<i64: 256, 128>}, {pipeline_mode = #tpu.pipeline_mode<synchronous>, transform_indices = @transform_1, window_bounds = array<i64: 128, 128>}, {pipeline_mode = #tpu.pipeline_mode<synchronous>, transform_indices = @transform_2, window_bounds = array<i64: 1, 128>}, {pipeline_mode = #tpu.pipeline_mode<synchronous>, transform_indices = @transform_3, window_bounds = array<i64: 128, 128>}, {pipeline_mode = #tpu.pipeline_mode<synchronous>, transform_indices = @transform_4, window_bounds = array<i64: 1, 128>}, {transform_indices = @transform_5, window_bounds = array<i64: 256, 128>}]} {
    %c0 = arith.constant 0 : index
    %c0_0 = arith.constant 0 : index
    %0 = vector.load %arg1[%c0, %c0_0] : memref<256x128xbf16, #tpu.memory_space<vmem>>, vector<256x128xbf16>
    %c0_1 = arith.constant 0 : index
    %c0_2 = arith.constant 0 : index
    %1 = vector.load %arg2[%c0_1, %c0_2] : memref<128x128xbf16, #tpu.memory_space<vmem>>, vector<128x128xbf16>
    %cst = arith.constant dense<0.000000e+00> : vector<256x128xf32>
    %2 = tpu.matmul %0, %1, %cst {dimension_numbers = #tpu.dot_dimension_numbers<[1], [0], [0], [1], [0, 0, 1, 1], [], []>} : vector<256x128xbf16>, vector<128x128xbf16>, vector<256x128xf32> -> vector<256x128xf32>
    %c0_3 = arith.constant 0 : index
    %c0_4 = arith.constant 0 : index
    %3 = vector.load %arg3[%c0_3, %c0_4] : memref<1x128xf32, #tpu.memory_space<vmem>>, vector<1x128xf32>
    %4 = vector.broadcast %3 : vector<1x128xf32> to vector<256x128xf32>
    %5 = arith.addf %2, %4 : vector<256x128xf32>
    %cst_5 = arith.constant 5.000000e-01 : f32
    %6 = vector.broadcast %cst_5 : f32 to vector<256x128xf32>
    %7 = arith.mulf %6, %5 : vector<256x128xf32>
    %cst_6 = arith.constant 0.707106769 : f32
    %8 = vector.broadcast %cst_6 : f32 to vector<256x128xf32>
    %9 = arith.mulf %5, %8 : vector<256x128xf32>
    %10 = math.erf %9 : vector<256x128xf32>
    %cst_7 = arith.constant 1.000000e+00 : f32
    %11 = vector.broadcast %cst_7 : f32 to vector<256x128xf32>
    %12 = arith.addf %11, %10 : vector<256x128xf32>
    %13 = arith.mulf %7, %12 : vector<256x128xf32>
    %14 = arith.truncf %13 : vector<256x128xf32> to vector<256x128xbf16>
    %c0_8 = arith.constant 0 : index
    %c0_9 = arith.constant 0 : index
    %15 = vector.load %arg4[%c0_8, %c0_9] : memref<128x128xbf16, #tpu.memory_space<vmem>>, vector<128x128xbf16>
    %cst_10 = arith.constant dense<0.000000e+00> : vector<256x128xf32>
    %16 = tpu.matmul %14, %15, %cst_10 {dimension_numbers = #tpu.dot_dimension_numbers<[1], [0], [0], [1], [0, 0, 1, 1], [], []>} : vector<256x128xbf16>, vector<128x128xbf16>, vector<256x128xf32> -> vector<256x128xf32>
    %c0_11 = arith.constant 0 : index
    %c0_12 = arith.constant 0 : index
    %17 = vector.load %arg5[%c0_11, %c0_12] : memref<1x128xf32, #tpu.memory_space<vmem>>, vector<1x128xf32>
    %18 = vector.broadcast %17 : vector<1x128xf32> to vector<256x128xf32>
    %19 = arith.addf %16, %18 : vector<256x128xf32>
    %c0_13 = arith.constant 0 : index
    %c0_14 = arith.constant 0 : index
    %20 = vector.load %arg6[%c0_13, %c0_14] : memref<256x128xf32, #tpu.memory_space<vmem>>, vector<256x128xf32>
    tpu.vector_store %arg6[%c0_13, %c0_14], %19 {strides = array<i32>} : memref<256x128xf32, #tpu.memory_space<vmem>>, vector<256x128xf32>,
    return
  }
  func.func @transform_0(%arg0: i32) -> (i32, i32) {
    %c0_i32 = arith.constant 0 : i32
    %c0_i32_0 = arith.constant 0 : i32
    return %arg0, %c0_i32 : i32, i32
  }
  func.func @transform_1(%arg0: i32) -> (i32, i32) {
    %c0_i32 = arith.constant 0 : i32
    %c0_i32_0 = arith.constant 0 : i32
    %c0_i32_1 = arith.constant 0 : i32
    return %c0_i32, %c0_i32_0 : i32, i32
  }
  func.func @transform_2(%arg0: i32) -> (i32, i32) {
    %c0_i32 = arith.constant 0 : i32
    %c0_i32_0 = arith.constant 0 : i32
    %c0_i32_1 = arith.constant 0 : i32
    return %c0_i32, %c0_i32_0 : i32, i32
  }
  func.func @transform_3(%arg0: i32) -> (i32, i32) {
    %c0_i32 = arith.constant 0 : i32
    %c0_i32_0 = arith.constant 0 : i32
    %c0_i32_1 = arith.constant 0 : i32
    return %c0_i32, %c0_i32_0 : i32, i32
  }
  func.func @transform_4(%arg0: i32) -> (i32, i32) {
    %c0_i32 = arith.constant 0 : i32
    %c0_i32_0 = arith.constant 0 : i32
    %c0_i32_1 = arith.constant 0 : i32
    return %c0_i32, %c0_i32_0 : i32, i32
  }
  func.func @transform_5(%arg0: i32) -> (i32, i32) {
    %c0_i32 = arith.constant 0 : i32
    %c0_i32_0 = arith.constant 0 : i32
    return %arg0, %c0_i32 : i32, i32
  }
}

</mosaic_0001>

<bundles_post_ra>
// kernel: tpu_custom_call.1
= control target key start
LH: loop header
LB: loop body
LE: loop exit
PB: predicated region body
PF: predicated region fallthrough
CT: control target
= control target key end

     0   :  { %10 = vsyncpa [#allocation3], 0  ;;  %s1489_s0 = inlined_call_operand.hbm [shape: bf16[256,128], index: 0, kind: input, shape index: {}]   ;;  %s1490_s1 = inlined_call_operand.hbm [shape: bf16[128,128], index: 1, kind: input, shape index: {}]   ;;  %s1491_s2 = inlined_call_operand.vmem [shape: f32[1,128], index: 2, kind: input, shape index: {}]   ;;  %s1492_s3 = inlined_call_operand.hbm [shape: bf16[128,128], index: 3, kind: input, shape index: {}]   ;;  %s1493_s4 = inlined_call_operand.vmem [shape: f32[1,128], index: 4, kind: input, shape index: {}]   ;;  %s1494_s5 = inlined_call_operand.hbm [shape: f32[256,128], index: 5, kind: output, shape index: {}]  }
   0x1   :  { %11 = vsyncpa [#allocation6], 0 }
   0x2   :  { %12 = vsyncpa [#allocation4], 0  ;;  %s1257_s18 = smov [#allocation5]   ;;  %s1258_s20 = smov [#allocation2]  }
   0x3   :  { %s30_s19 = sshll.u32 %s1257_s18, 4  ;;  %s18_s21 = sshll.u32 %s1258_s20, 4  ;;  %s31_s19 = int_to_ptr.vmem [resolvable:$true] %s30_s19  ;;  %s1295_s21 = int_to_ptr.vmem [resolvable:$true] %s18_s21 }
   0x4   :  { %s1163_s24 = scalar_lea.hbm %s1490_s1, 1024 }
   0x5   :  { %p1164_p0 = scmp.ne.s32.totalorder %s1490_s1, %s1163_s24  ;;  %p1167_p1 = scmp.lt.u32.totalorder %s1163_s24, %s1490_s1 }
   0x7   :  { %p1169_p2 = pnand %p1167_p1, %p1164_p0 }
   0x9   :  { %1172 = shalt.err (!%p1169_p2)
}
   0xa   :  { %s1173_s29 = scalar_lea.vmem %s31_s19, 1024  ;;  %p1178_p4 = scmp.lt.s32.totalorder %s31_s19, %s31_s19 }
   0xb   :  { %p1174_p3 = scmp.ne.s32.totalorder %s31_s19, %s1173_s29  ;;  %p1179_p5 = scmp.lt.s32.totalorder %s1173_s29, %s1173_s29 }
   0xd   :  { %p1180_p6 = por %p1179_p5, %p1178_p4 }
   0xf   :  { %p1181_p7 = pnand %p1180_p6, %p1174_p3 }
  0x11   :  { %1184 = shalt.err (!%p1181_p7)
}
  0x12   :  { %s1259_s30 = smov 64   ;;  %s1260_s6 = smov 4  }
  0x13   :  { %36 = dma.hbm_to_vmem [thread:$0]  %s1490_s1, 1024, %s31_s19, [#allocation6], %s1259_s30, %s1259_s30, %s1260_s6  }
  0x14   :  { %s1185_s11 = scalar_lea.hbm %s1489_s0, 2048 }
  0x15   :  { %p1186_p8 = scmp.ne.s32.totalorder %s1489_s0, %s1185_s11  ;;  %p1189_p9 = scmp.lt.u32.totalorder %s1185_s11, %s1489_s0 }
  0x17   :  { %p1191_p10 = pnand %p1189_p9, %p1186_p8 }
  0x19   :  { %1194 = shalt.err (!%p1191_p10)
}
  0x1a   :  { %s1195_s16 = scalar_lea.vmem %s1295_s21, 2048  ;;  %p1200_p12 = scmp.lt.s32.totalorder %s1295_s21, %s1295_s21 }
  0x1b   :  { %p1196_p11 = scmp.ne.s32.totalorder %s1295_s21, %s1195_s16  ;;  %p1201_p13 = scmp.lt.s32.totalorder %s1195_s16, %s1195_s16 }
  0x1d   :  { %p1202_p0 = por %p1201_p13, %p1200_p12 }
  0x1f   :  { %p1203_p1 = pnand %p1202_p0, %p1196_p11 }
  0x21   :  { %1206 = shalt.err (!%p1203_p1)
}
  0x22   :  { %24 = dma.hbm_to_vmem [thread:$0]  %s1489_s0, 2048, %s1295_s21, [#allocation3], %s1259_s30, %s1259_s30, %s1260_s6  }
  0x23   :  { %s1261_s18 = smov [#allocation7]   ;;  %s1207_s23 = scalar_lea.hbm %s1492_s3, 1024 }
  0x24   :  { %s44_s19 = sshll.u32 %s1261_s18, 4  ;;  %p1208_p2 = scmp.ne.s32.totalorder %s1492_s3, %s1207_s23  ;;  %s45_s19 = int_to_ptr.vmem [resolvable:$true] %s44_s19 }
  0x25   :  { %p1211_p3 = scmp.lt.u32.totalorder %s1207_s23, %s1492_s3 }
  0x27   :  { %p1213_p4 = pnand %p1211_p3, %p1208_p2 }
  0x29   :  { %1216 = shalt.err (!%p1213_p4)
}
  0x2a   :  { %s1217_s28 = scalar_lea.vmem %s45_s19, 1024  ;;  %p1222_p6 = scmp.lt.s32.totalorder %s45_s19, %s45_s19 }
  0x2b   :  { %p1218_p5 = scmp.ne.s32.totalorder %s45_s19, %s1217_s28  ;;  %p1223_p7 = scmp.lt.s32.totalorder %s1217_s28, %s1217_s28 }
  0x2d   :  { %p1224_p8 = por %p1223_p7, %p1222_p6 }
  0x2f   :  { %p1225_p9 = pnand %p1224_p8, %p1218_p5 }
  0x31   :  { %1228 = shalt.err (!%p1225_p9)
}
  0x32   :  { %50 = dma.hbm_to_vmem [thread:$0]  %s1492_s3, 1024, %s45_s19, [#allocation6], %s1259_s30, %s1259_s30, %s1260_s6  }
  0x33   :  { %1251 = dma.done.wait [#allocation3], 2048  }
  0x34   :  { %1252 = vsyncadd [#allocation3], 4294965248 }
  0x35   :  { %1253 = dma.done.wait [#allocation6], 2048  }
  0x36   :  { %1254 = vsyncadd [#allocation6], 4294965248  ;;  %v1067_v0 = vld [vmem:[#allocation5] sm:$0xff]   ;;  %v1068_v1 = vld [vmem:[#allocation5 + $0x8] sm:$0xff]  }
  0x37   :  { %963 = vmatprep.subr.bf16.mxu0 %v1067_v0  ;;  %v1069_v2 = vld [vmem:[#allocation5 + $0x10] sm:$0xff]   ;;  %v1070_v3 = vld [vmem:[#allocation5 + $0x18] sm:$0xff]   ;;  %v1075_v4 = vld [vmem:[#allocation2] sm:$0xff]  }
  0x38   :  { %964 = vmatpush3.bf16.msra.mxu0 %v1067_v0  ;;  %979 = vmatprep.mubr.bf16.mxu0 %v1075_v4  ;;  %v1071_v5 = vld [vmem:[#allocation5 + $0x20] sm:$0xff]   ;;  %v1072_v6 = vld [vmem:[#allocation5 + $0x28] sm:$0xff]   ;;  %v1073_v7 = vld [vmem:[#allocation5 + $0x30] sm:$0xff]  }
  0x39   :  { %965 = vmatprep.subr.bf16.mxu0 %v1068_v1  ;;  %v1074_v8 = vld [vmem:[#allocation5 + $0x38] sm:$0xff]   ;;  %v1091_v9 = vld [vmem:[#allocation7] sm:$0xff]   ;;  %v1092_v10 = vld [vmem:[#allocation7 + $0x8] sm:$0xff]  }
  0x3a   :  { %1011 = vmatprep.subr.bf16.mxu1 %v1091_v9  ;;  %v1076_v11 = vld [vmem:[#allocation2 + $0x8] sm:$0xff]   ;;  %v1077_v12 = vld [vmem:[#allocation2 + $0x10] sm:$0xff]   ;;  %v1078_v13 = vld [vmem:[#allocation2 + $0x18] sm:$0xff]  }
  0x3b   :  { %1012 = vmatpush3.bf16.msra.mxu1 %v1091_v9  ;;  %v1079_v14 = vld [vmem:[#allocation2 + $0x20] sm:$0xff]   ;;  %v1080_v15 = vld [vmem:[#allocation2 + $0x28] sm:$0xff]   ;;  %v1081_v16 = vld [vmem:[#allocation2 + $0x30] sm:$0xff]  }
  0x3c   :  { %966 = vmatpush3.bf16.msra.mxu0 %v1068_v1  ;;  %1013 = vmatprep.subr.bf16.mxu1 %v1092_v10  ;;  %v1082_v17 = vld [vmem:[#allocation2 + $0x38] sm:$0xff]   ;;  %v1083_v18 = vld [vmem:[#allocation2 + $0x40] sm:$0xff]   ;;  %v1084_v19 = vld [vmem:[#allocation2 + $0x48] sm:$0xff]  }
  0x3d   :  { %967 = vmatprep.subr.bf16.mxu0 %v1069_v2  ;;  %v1085_v20 = vld [vmem:[#allocation2 + $0x50] sm:$0xff]   ;;  %v1086_v21 = vld [vmem:[#allocation2 + $0x58] sm:$0xff]   ;;  %v1087_v22 = vld [vmem:[#allocation2 + $0x60] sm:$0xff]  }
  0x3e   :  { %v1088_v23 = vld [vmem:[#allocation2 + $0x68] sm:$0xff]   ;;  %v1089_v24 = vld [vmem:[#allocation2 + $0x70] sm:$0xff]   ;;  %v1090_v25 = vld [vmem:[#allocation2 + $0x78] sm:$0xff]  }
  0x3f   :  { %1014 = vmatpush3.bf16.msra.mxu1 %v1092_v10  ;;  %v1093_v26 = vld [vmem:[#allocation7 + $0x10] sm:$0xff]   ;;  %v1094_v27 = vld [vmem:[#allocation7 + $0x18] sm:$0xff]   ;;  %v1095_v28 = vld [vmem:[#allocation7 + $0x20] sm:$0xff]  }
  0x40   :  { %968 = vmatpush3.bf16.msra.mxu0 %v1069_v2  ;;  %1015 = vmatprep.subr.bf16.mxu1 %v1093_v26  ;;  %v1096_v29 = vld [vmem:[#allocation7 + $0x28] sm:$0xff]   ;;  %v1097_v30 = vld [vmem:[#allocation7 + $0x30] sm:$0xff]   ;;  %v1098_v31 = vld [vmem:[#allocation7 + $0x38] sm:$0xff]  }
  0x41   :  { %969 = vmatprep.subr.bf16.mxu0 %v1070_v3  ;;  %v1350_v32 = vld [vmem:[%s1491_s2] ss:$0 sm:$0xff] }
  0x43   :  { %1016 = vmatpush3.bf16.msra.mxu1 %v1093_v26 }
  0x44   :  { %970 = vmatpush3.bf16.msra.mxu0 %v1070_v3  ;;  %1017 = vmatprep.subr.bf16.mxu1 %v1094_v27 }
  0x45   :  { %971 = vmatprep.subr.bf16.mxu0 %v1071_v5 }
  0x47   :  { %1018 = vmatpush3.bf16.msra.mxu1 %v1094_v27 }
  0x48   :  { %972 = vmatpush3.bf16.msra.mxu0 %v1071_v5  ;;  %1019 = vmatprep.subr.bf16.mxu1 %v1095_v28 }
  0x49   :  { %973 = vmatprep.subr.bf16.mxu0 %v1072_v6 }
  0x4b   :  { %1020 = vmatpush3.bf16.msra.mxu1 %v1095_v28 }
  0x4c   :  { %974 = vmatpush3.bf16.msra.mxu0 %v1072_v6  ;;  %1021 = vmatprep.subr.bf16.mxu1 %v1096_v29 }
  0x4d   :  { %975 = vmatprep.subr.bf16.mxu0 %v1073_v7 }
  0x4f   :  { %1022 = vmatpush3.bf16.msra.mxu1 %v1096_v29 }
  0x50   :  { %976 = vmatpush3.bf16.msra.mxu0 %v1073_v7  ;;  %1023 = vmatprep.subr.bf16.mxu1 %v1097_v30 }
  0x51   :  { %977 = vmatprep.subr.bf16.mxu0 %v1074_v8 }
  0x53   :  { %1024 = vmatpush3.bf16.msra.mxu1 %v1097_v30 }
  0x54   :  { %978 = vmatpush3.bf16.msra.mxu0 %v1074_v8  ;;  %1025 = vmatprep.subr.bf16.mxu1 %v1098_v31 }
  0x57   :  { %980 = vmatmul.mubr.bf16.vlgmr.msra.gmra.mrb[0].mxu0 %v1076_v11  ;;  %1026 = vmatpush3.bf16.msra.mxu1 %v1098_v31 }
  0x58   :  { %983 = vmatprep.mubr.bf16.mxu0 %v1077_v12 }
  0x5f   :  { %984 = vmatmul.mubr.bf16.gmra.mrb[4].mxu0 %v1078_v13 }
  0x60   :  { %987 = vmatprep.mubr.bf16.mxu0 %v1079_v14 }
  0x67   :  { %988 = vmatmul.mubr.bf16.gmra.mrb[8].mxu0 %v1080_v15 }
  0x68   :  { %991 = vmatprep.mubr.bf16.mxu0 %v1081_v16 }
  0x6f   :  { %992 = vmatmul.mubr.bf16.gmra.mrb[12].mxu0 %v1082_v17 }
  0x70   :  { %995 = vmatprep.mubr.bf16.mxu0 %v1083_v18 }
  0x77   :  { %996 = vmatmul.mubr.bf16.gmra.mrb[16].mxu0 %v1084_v19 }
  0x78   :  { %999 = vmatprep.mubr.bf16.mxu0 %v1085_v20 }
  0x7f   :  { %1000 = vmatmul.mubr.bf16.gmra.mrb[20].mxu0 %v1086_v21 }
  0x80   :  { %1003 = vmatprep.mubr.bf16.mxu0 %v1087_v22 }
  0x87   :  { %1004 = vmatmul.mubr.bf16.gmra.mrb[24].mxu0 %v1088_v23 }
  0x88   :  { %1007 = vmatprep.mubr.bf16.mxu0 %v1089_v24 }
  0x8f   :  { %1008 = vmatmul.mubr.bf16.gmra.mrb[28].mxu0 %v1090_v25 }
 0x12a   :  { %v981_v33 = vpop.f32.mrb[0].mxu0 }
 0x12b   :  { %v305_v34 = vadd.f32 %v981_v33, %v1350_v32  ;;  %v296_v35 = vpop.f32.mrb[1].mxu0 }
 0x12c   :  { %v297_v36 = vadd.f32 %v1350_v32, %v296_v35  ;;  %v982_v37 = vpop.f32.mrb[2].mxu0 }
 0x12d   :  { %v457_v38 = vmul.f32 0.70710677, %v305_v34  ;;  %v308_v39 = vadd.f32 %v982_v37, %v1350_v32  ;;  %v299_v40 = vpop.f32.mrb[3].mxu0  ;;  %v425_v61 = vmul.f32 0.5, %v305_v34 }
 0x12e   :  { %v455_v41 = vmul.f32 0.70710677, %v297_v36  ;;  %v300_v42 = vadd.f32 %v1350_v32, %v299_v40  ;;  %v423_v7 = vmul.f32 0.5, %v297_v36 }
 0x12f   :  { %1099 = verf.f32 %v457_v38  ;;  %v458_v43 = vmul.f32 0.70710677, %v308_v39  ;;  %v426_v2 = vmul.f32 0.5, %v308_v39 }
 0x130   :  { %1101 = verf.f32 %v455_v41  ;;  %v456_v44 = vmul.f32 0.70710677, %v300_v42  ;;  %v424_v13 = vmul.f32 0.5, %v300_v42 }
 0x131   :  { %1103 = verf.f32 %v458_v43 }
 0x132   :  { %1105 = verf.f32 %v456_v44  ;;  %v985_v45 = vpop.f32.mrb[4].mxu0 }
 0x133   :  { %v321_v46 = vadd.f32 %v985_v45, %v1350_v32  ;;  %v312_v47 = vpop.f32.mrb[5].mxu0 }
 0x134   :  { %v313_v48 = vadd.f32 %v1350_v32, %v312_v47  ;;  %v986_v49 = vpop.f32.mrb[6].mxu0 }
 0x135   :  { %v461_v50 = vmul.f32 0.70710677, %v321_v46  ;;  %v324_v51 = vadd.f32 %v986_v49, %v1350_v32  ;;  %v315_v52 = vpop.f32.mrb[7].mxu0  ;;  %v429_v33 = vmul.f32 0.5, %v321_v46 }
 0x136   :  { %v459_v53 = vmul.f32 0.70710677, %v313_v48  ;;  %v316_v54 = vadd.f32 %v1350_v32, %v315_v52  ;;  %v427_v38 = vmul.f32 0.5, %v313_v48 }
 0x137   :  { %1107 = verf.f32 %v461_v50  ;;  %v462_v55 = vmul.f32 0.70710677, %v324_v51  ;;  %v430_v34 = vmul.f32 0.5, %v324_v51 }
 0x138   :  { %1109 = verf.f32 %v459_v53  ;;  %v460_v56 = vmul.f32 0.70710677, %v316_v54  ;;  %v428_v39 = vmul.f32 0.5, %v316_v54 }
 0x139   :  { %v1100_v57 = vpop.eup %1099  ;;  %1111 = verf.f32 %v462_v55 }
 0x13a   :  { %v1102_v58 = vpop.eup %1101  ;;  %1113 = verf.f32 %v460_v56  ;;  %v989_v59 = vpop.f32.mrb[8].mxu0  ;;  %v521_v62 = vadd.f32 1.0, %v1100_v57 }
 0x13b   :  { %v1104_v60 = vpop.eup %1103  ;;  %v1361_v63 = vadd.f32 %v989_v59, %v1350_v32  ;;  %v328_v0 = vpop.f32.mrb[9].mxu0  ;;  %v519_v6 = vadd.f32 1.0, %v1102_v58 }
 0x13c   :  { %v1106_v1 = vpop.eup %1105  ;;  %v522_v3 = vadd.f32 1.0, %v1104_v60  ;;  %v1364_v4 = vadd.f32 %v1350_v32, %v328_v0  ;;  %v990_v5 = vpop.f32.mrb[10].mxu0  ;;  %v553_v16 = vmul.f32 %v521_v62, %v425_v61 }
 0x13d   :  { %v465_v8 = vmul.f32 0.70710677, %v1361_v63  ;;  %v1368_v9 = vadd.f32 %v990_v5, %v1350_v32  ;;  %v331_v10 = vpop.f32.mrb[11].mxu0  ;;  %v520_v11 = vadd.f32 1.0, %v1106_v1  ;;  %v551_v19 = vmul.f32 %v519_v6, %v423_v7 }
 0x13e   :  { %v554_v12 = vmul.f32 %v522_v3, %v426_v2  ;;  %v463_v14 = vmul.f32 0.70710677, %v1364_v4  ;;  %v1372_v15 = vadd.f32 %v1350_v32, %v331_v10  ;;  %v433_v0 = vmul.f32 0.5, %v1361_v63 }
 0x13f   :  { %1115 = verf.f32 %v465_v8  ;;  %v466_v17 = vmul.f32 0.70710677, %v1368_v9  ;;  %v552_v20 = vmul.f32 %v520_v11, %v424_v13  ;;  %v434_v1 = vmul.f32 0.5, %v1368_v9 }
 0x140   :  { %1117 = verf.f32 %v463_v14  ;;  %v464_v18 = vmul.f32 0.70710677, %v1372_v15  ;;  %v584_v22 = vpack.c.bf16 %v554_v12, %v553_v16  ;;  %v431_v6 = vmul.f32 0.5, %v1364_v4 }
 0x141   :  { %v1108_v21 = vpop.eup %1107  ;;  %1119 = verf.f32 %v466_v17  ;;  %v583_v26 = vpack.c.bf16 %v552_v20, %v551_v19  ;;  %v432_v7 = vmul.f32 0.5, %v1372_v15 }
 0x142   :  { %v1110_v23 = vpop.eup %1109  ;;  %v525_v24 = vadd.f32 1.0, %v1108_v21  ;;  %1121 = verf.f32 %v464_v18  ;;  %v993_v25 = vpop.f32.mrb[12].mxu0 }
 0x143   :  { %v1112_v27 = vpop.eup %1111  ;;  %v523_v28 = vadd.f32 1.0, %v1110_v23  ;;  %v1377_v29 = vadd.f32 %v993_v25, %v1350_v32  ;;  %v344_v30 = vpop.f32.mrb[13].mxu0  ;;  %1027 = vmatprep.mubr.bf16.mxu1 %v583_v26 }
 0x144   :  { %v1114_v31 = vpop.eup %1113  ;;  %v526_v35 = vadd.f32 1.0, %v1112_v27  ;;  %v1380_v36 = vadd.f32 %v1350_v32, %v344_v30  ;;  %v994_v37 = vpop.f32.mrb[14].mxu0  ;;  %1028 = vmatmul.mubr.bf16.vlgmr.msra.gmra.mrb[0].mxu1 %v584_v22  ;;  %v557_v43 = vmul.f32 %v525_v24, %v429_v33 }
 0x145   :  { %v524_v40 = vadd.f32 1.0, %v1114_v31  ;;  %v469_v41 = vmul.f32 0.70710677, %v1377_v29  ;;  %v347_v42 = vpop.f32.mrb[15].mxu0  ;;  %v356_v46 = vadd.f32 %v994_v37, %v1350_v32  ;;  %v555_v47 = vmul.f32 %v523_v28, %v427_v38 }
 0x146   :  { %v558_v44 = vmul.f32 %v526_v35, %v430_v34  ;;  %v467_v45 = vmul.f32 0.70710677, %v1380_v36  ;;  %v348_v50 = vadd.f32 %v1350_v32, %v347_v42  ;;  %v437_v27 = vmul.f32 0.5, %v1377_v29 }
 0x147   :  { %v556_v49 = vmul.f32 %v524_v40, %v428_v39  ;;  %1123 = verf.f32 %v469_v41  ;;  %v470_v51 = vmul.f32 0.70710677, %v356_v46  ;;  %v435_v34 = vmul.f32 0.5, %v1380_v36 }
 0x148   :  { %1125 = verf.f32 %v467_v45  ;;  %v586_v48 = vpack.c.bf16 %v558_v44, %v557_v43  ;;  %v468_v53 = vmul.f32 0.70710677, %v348_v50  ;;  %v438_v35 = vmul.f32 0.5, %v356_v46 }
 0x149   :  { %v1116_v52 = vpop.eup %1115  ;;  %v585_v54 = vpack.c.bf16 %v556_v49, %v555_v47  ;;  %1127 = verf.f32 %v470_v51  ;;  %v436_v40 = vmul.f32 0.5, %v348_v50 }
 0x14a   :  { %v1118_v55 = vpop.eup %1117  ;;  %v529_v56 = vadd.f32 1.0, %v1116_v52  ;;  %v997_v57 = vpop.f32.mrb[16].mxu0  ;;  %1129 = verf.f32 %v468_v53 }
 0x14b   :  { %v1120_v58 = vpop.eup %1119  ;;  %v527_v59 = vadd.f32 1.0, %v1118_v55  ;;  %v1387_v60 = vadd.f32 %v997_v57, %v1350_v32  ;;  %v360_v61 = vpop.f32.mrb[17].mxu0  ;;  %1031 = vmatprep.mubr.bf16.mxu1 %v585_v54 }
 0x14c   :  { %v1122_v62 = vpop.eup %1121  ;;  %v530_v2 = vadd.f32 1.0, %v1120_v58  ;;  %v1392_v3 = vadd.f32 %v1350_v32, %v360_v61  ;;  %v998_v5 = vpop.f32.mrb[18].mxu0  ;;  %1032 = vmatmul.mubr.bf16.gmra.mrb[4].mxu1 %v586_v48  ;;  %v561_v12 = vmul.f32 %v529_v56, %v433_v0 }
 0x14d   :  { %v528_v8 = vadd.f32 1.0, %v1122_v62  ;;  %v473_v10 = vmul.f32 0.70710677, %v1387_v60  ;;  %v363_v11 = vpop.f32.mrb[19].mxu0  ;;  %v372_v9 = vadd.f32 %v998_v5, %v1350_v32  ;;  %v559_v14 = vmul.f32 %v527_v59, %v431_v6 }
 0x14e   :  { %v562_v13 = vmul.f32 %v530_v2, %v434_v1  ;;  %v471_v63 = vmul.f32 0.70710677, %v1392_v3  ;;  %v364_v17 = vadd.f32 %v1350_v32, %v363_v11  ;;  %v441_v58 = vmul.f32 0.5, %v1387_v60 }
 0x14f   :  { %v560_v16 = vmul.f32 %v528_v8, %v432_v7  ;;  %1131 = verf.f32 %v473_v10  ;;  %v474_v4 = vmul.f32 0.70710677, %v372_v9  ;;  %v439_v1 = vmul.f32 0.5, %v1392_v3 }
 0x150   :  { %1133 = verf.f32 %v471_v63  ;;  %v588_v18 = vpack.c.bf16 %v562_v13, %v561_v12  ;;  %v472_v19 = vmul.f32 0.70710677, %v364_v17  ;;  %v442_v2 = vmul.f32 0.5, %v372_v9 }
 0x151   :  { %v1124_v15 = vpop.eup %1123  ;;  %v587_v20 = vpack.c.bf16 %v560_v16, %v559_v14  ;;  %1135 = verf.f32 %v474_v4  ;;  %v440_v8 = vmul.f32 0.5, %v364_v17 }
 0x152   :  { %v1126_v21 = vpop.eup %1125  ;;  %v1001_v22 = vpop.f32.mrb[20].mxu0  ;;  %v533_v23 = vadd.f32 1.0, %v1124_v15  ;;  %1137 = verf.f32 %v472_v19 }
 0x153   :  { %v1401_v24 = vadd.f32 %v1001_v22, %v1350_v32  ;;  %v376_v25 = vpop.f32.mrb[21].mxu0  ;;  %1035 = vmatprep.mubr.bf16.mxu1 %v587_v20  ;;  %v1128_v26 = vpop.eup %1127  ;;  %v531_v28 = vadd.f32 1.0, %v1126_v21 }
 0x154   :  { %v1405_v30 = vadd.f32 %v1350_v32, %v376_v25  ;;  %v1002_v31 = vpop.f32.mrb[22].mxu0  ;;  %v1130_v33 = vpop.eup %1129  ;;  %v534_v37 = vadd.f32 1.0, %v1128_v26  ;;  %1036 = vmatmul.mubr.bf16.gmra.mrb[8].mxu1 %v588_v18  ;;  %v565_v43 = vmul.f32 %v533_v23, %v437_v27 }
 0x155   :  { %v477_v38 = vmul.f32 0.70710677, %v1401_v24  ;;  %v379_v39 = vpop.f32.mrb[23].mxu0  ;;  %v532_v41 = vadd.f32 1.0, %v1130_v33  ;;  %v1411_v29 = vadd.f32 %v1002_v31, %v1350_v32  ;;  %v563_v36 = vmul.f32 %v531_v28, %v435_v34 }
 0x156   :  { %v475_v42 = vmul.f32 0.70710677, %v1405_v30  ;;  %v566_v44 = vmul.f32 %v534_v37, %v438_v35  ;;  %v1414_v45 = vadd.f32 %v1350_v32, %v379_v39  ;;  %v445_v25 = vmul.f32 0.5, %v1401_v24 }
 0x157   :  { %1139 = verf.f32 %v477_v38  ;;  %v564_v46 = vmul.f32 %v532_v41, %v436_v40  ;;  %v478_v47 = vmul.f32 0.70710677, %v1411_v29  ;;  %v443_v33 = vmul.f32 0.5, %v1405_v30 }
 0x158   :  { %1141 = verf.f32 %v475_v42  ;;  %v476_v50 = vmul.f32 0.70710677, %v1414_v45  ;;  %v590_v51 = vpack.c.bf16 %v566_v44, %v565_v43  ;;  %v446_v34 = vmul.f32 0.5, %v1411_v29 }
 0x159   :  { %v1132_v49 = vpop.eup %1131  ;;  %1143 = verf.f32 %v478_v47  ;;  %v589_v53 = vpack.c.bf16 %v564_v46, %v563_v36  ;;  %v444_v39 = vmul.f32 0.5, %v1414_v45 }
 0x15a   :  { %v1134_v48 = vpop.eup %1133  ;;  %v1005_v52 = vpop.f32.mrb[24].mxu0  ;;  %v537_v54 = vadd.f32 1.0, %v1132_v49  ;;  %1145 = verf.f32 %v476_v50 }
 0x15b   :  { %v1419_v55 = vadd.f32 %v1005_v52, %v1350_v32  ;;  %v392_v56 = vpop.f32.mrb[25].mxu0  ;;  %v1136_v57 = vpop.eup %1135  ;;  %v535_v59 = vadd.f32 1.0, %v1134_v48  ;;  %1039 = vmatprep.mubr.bf16.mxu1 %v589_v53 }
 0x15c   :  { %v1423_v61 = vadd.f32 %v1350_v32, %v392_v56  ;;  %v1006_v62 = vpop.f32.mrb[26].mxu0  ;;  %v1138_v0 = vpop.eup %1137  ;;  %v538_v5 = vadd.f32 1.0, %v1136_v57  ;;  %1040 = vmatmul.mubr.bf16.gmra.mrb[12].mxu1 %v590_v51  ;;  %v569_v12 = vmul.f32 %v537_v54, %v441_v58 }
 0x15d   :  { %v481_v6 = vmul.f32 0.70710677, %v1419_v55  ;;  %v395_v7 = vpop.f32.mrb[27].mxu0  ;;  %v536_v10 = vadd.f32 1.0, %v1138_v0  ;;  %v404_v60 = vadd.f32 %v1006_v62, %v1350_v32  ;;  %v567_v14 = vmul.f32 %v535_v59, %v439_v1 }
 0x15e   :  { %v479_v11 = vmul.f32 0.70710677, %v1423_v61  ;;  %v570_v13 = vmul.f32 %v538_v5, %v442_v2  ;;  %v396_v63 = vadd.f32 %v1350_v32, %v395_v7  ;;  %v449_v54 = vmul.f32 0.5, %v1419_v55 }
 0x15f   :  { %1147 = verf.f32 %v481_v6  ;;  %v568_v16 = vmul.f32 %v536_v10, %v440_v8  ;;  %v482_v3 = vmul.f32 0.70710677, %v404_v60  ;;  %v450_v56 = vmul.f32 0.5, %v404_v60 }
 0x160   :  { %1149 = verf.f32 %v479_v11  ;;  %v480_v4 = vmul.f32 0.70710677, %v396_v63  ;;  %v592_v18 = vpack.c.bf16 %v570_v13, %v569_v12  ;;  %v447_v57 = vmul.f32 0.5, %v1423_v61 }
 0x161   :  { %v1140_v9 = vpop.eup %1139  ;;  %1151 = verf.f32 %v482_v3  ;;  %v591_v19 = vpack.c.bf16 %v568_v16, %v567_v14  ;;  %v448_v58 = vmul.f32 0.5, %v396_v63 }
 0x162   :  { %v1142_v15 = vpop.eup %1141  ;;  %v1009_v17 = vpop.f32.mrb[28].mxu0  ;;  %v541_v20 = vadd.f32 1.0, %v1140_v9  ;;  %1153 = verf.f32 %v480_v4 }
 0x163   :  { %v417_v21 = vadd.f32 %v1009_v17, %v1350_v32  ;;  %v408_v22 = vpop.f32.mrb[29].mxu0  ;;  %v1144_v23 = vpop.eup %1143  ;;  %v539_v26 = vadd.f32 1.0, %v1142_v15  ;;  %1043 = vmatprep.mubr.bf16.mxu1 %v591_v19  ;;  %v1443_v19 = vld [vmem:[%s1493_s4] ss:$0 sm:$0xff]  ;;  %s1262_s4 = smov [#allocation8]  }
 0x164   :  { %v409_v27 = vadd.f32 %v1350_v32, %v408_v22  ;;  %v1010_v28 = vpop.f32.mrb[30].mxu0  ;;  %v1146_v31 = vpop.eup %1145  ;;  %v542_v35 = vadd.f32 1.0, %v1144_v23  ;;  %1044 = vmatmul.mubr.bf16.gmra.mrb[16].mxu1 %v592_v18  ;;  %v573_v42 = vmul.f32 %v541_v20, %v445_v25  ;;  %s868_s6 = sshll.u32 %s1262_s4, 4  ;;  %s869_s6 = int_to_ptr.vmem [resolvable:$true] %s868_s6 }
 0x165   :  { %v485_v37 = vmul.f32 0.70710677, %v417_v21  ;;  %v411_v38 = vpop.f32.mrb[31].mxu0  ;;  %v540_v40 = vadd.f32 1.0, %v1146_v31  ;;  %v420_v24 = vadd.f32 %v1010_v28, %v1350_v32  ;;  %v571_v36 = vmul.f32 %v539_v26, %v443_v33  ;;  %s1229_s7 = scalar_lea.vmem %s869_s6, 4096  ;;  %p1234_p11 = scmp.lt.s32.totalorder %s869_s6, %s869_s6 }
 0x166   :  { %v483_v41 = vmul.f32 0.70710677, %v409_v27  ;;  %v574_v43 = vmul.f32 %v542_v35, %v446_v34  ;;  %v412_v44 = vadd.f32 %v1350_v32, %v411_v38  ;;  %v453_v60 = vmul.f32 0.5, %v417_v21  ;;  %p1230_p10 = scmp.ne.s32.totalorder %s869_s6, %s1229_s7  ;;  %p1235_p12 = scmp.lt.s32.totalorder %s1229_s7, %s1229_s7 }
 0x167   :  { %1155 = verf.f32 %v485_v37  ;;  %v572_v46 = vmul.f32 %v540_v40, %v444_v39  ;;  %v486_v30 = vmul.f32 0.70710677, %v420_v24  ;;  %v454_v13 = vmul.f32 0.5, %v420_v24 }
 0x168   :  { %1157 = verf.f32 %v483_v41  ;;  %v484_v47 = vmul.f32 0.70710677, %v412_v44  ;;  %v594_v49 = vpack.c.bf16 %v574_v43, %v573_v42  ;;  %v451_v61 = vmul.f32 0.5, %v409_v27  ;;  %p1236_p13 = por %p1235_p12, %p1234_p11 }
 0x169   :  { %v1148_v29 = vpop.eup %1147  ;;  %1159 = verf.f32 %v486_v30  ;;  %v593_v51 = vpack.c.bf16 %v572_v46, %v571_v36  ;;  %v452_v63 = vmul.f32 0.5, %v412_v44 }
 0x16a   :  { %v1150_v50 = vpop.eup %1149  ;;  %v545_v45 = vadd.f32 1.0, %v1148_v29  ;;  %1161 = verf.f32 %v484_v47  ;;  %p1237_p0 = pnand %p1236_p13, %p1230_p10 }
 0x16b   :  { %v1152_v48 = vpop.eup %1151  ;;  %v543_v52 = vadd.f32 1.0, %v1150_v50  ;;  %1047 = vmatprep.mubr.bf16.mxu1 %v593_v51 }
 0x16c   :  { %v1154_v53 = vpop.eup %1153  ;;  %v546_v32 = vadd.f32 1.0, %v1152_v48  ;;  %1048 = vmatmul.mubr.bf16.gmra.mrb[20].mxu1 %v594_v49  ;;  %v577_v62 = vmul.f32 %v545_v45, %v449_v54 }
 0x16d   :  { %v544_v59 = vadd.f32 1.0, %v1154_v53  ;;  %v575_v1 = vmul.f32 %v543_v52, %v447_v57 }
 0x16e   :  { %v578_v0 = vmul.f32 %v546_v32, %v450_v56 }
 0x16f   :  { %v576_v2 = vmul.f32 %v544_v59, %v448_v58 }
 0x170   :  { %v596_v6 = vpack.c.bf16 %v578_v0, %v577_v62 }
 0x171   :  { %v1156_v5 = vpop.eup %1155  ;;  %v595_v8 = vpack.c.bf16 %v576_v2, %v575_v1 }
 0x172   :  { %v1158_v7 = vpop.eup %1157  ;;  %v549_v10 = vadd.f32 1.0, %v1156_v5 }
 0x173   :  { %v1160_v11 = vpop.eup %1159  ;;  %v547_v12 = vadd.f32 1.0, %v1158_v7  ;;  %1051 = vmatprep.mubr.bf16.mxu1 %v595_v8 }
 0x174   :  { %v1162_v55 = vpop.eup %1161  ;;  %v550_v14 = vadd.f32 1.0, %v1160_v11  ;;  %1052 = vmatmul.mubr.bf16.gmra.mrb[24].mxu1 %v596_v6  ;;  %v581_v3 = vmul.f32 %v549_v10, %v453_v60 }
 0x175   :  { %v548_v16 = vadd.f32 1.0, %v1162_v55  ;;  %v579_v4 = vmul.f32 %v547_v12, %v451_v61 }
 0x176   :  { %v582_v9 = vmul.f32 %v550_v14, %v454_v13 }
 0x177   :  { %v580_v18 = vmul.f32 %v548_v16, %v452_v63 }
 0x178   :  { %v598_v15 = vpack.c.bf16 %v582_v9, %v581_v3 }
 0x179   :  { %v597_v17 = vpack.c.bf16 %v580_v18, %v579_v4 }
 0x17b   :  { %1055 = vmatprep.mubr.bf16.mxu1 %v597_v17 }
 0x17c   :  { %1056 = vmatmul.mubr.bf16.gmra.mrb[28].mxu1 %v598_v15 }
 0x217   :  { %v1029_v20 = vpop.f32.mrb[0].mxu1 }
 0x218   :  { %v713_v21 = vadd.f32 %v1029_v20, %v1443_v19  ;;  %v704_v22 = vpop.f32.mrb[1].mxu1 }
 0x219   :  { %v705_v23 = vadd.f32 %v1443_v19, %v704_v22  ;;  %v1030_v25 = vpop.f32.mrb[2].mxu1 }
 0x21a   :  { %833 = vst [vmem:[#allocation8 + $0x10] sm:$0xff] %v713_v21  ;;  %v716_v26 = vadd.f32 %v1030_v25, %v1443_v19  ;;  %v707_v27 = vpop.f32.mrb[3].mxu1 }
 0x21b   :  { %831 = vst [vmem:[#allocation8] sm:$0xff] %v705_v23  ;;  %v708_v28 = vadd.f32 %v1443_v19, %v707_v27 }
 0x21c   :  { %834 = vst [vmem:[#allocation8 + $0x18] sm:$0xff] %v716_v26 }
 0x21d   :  { %832 = vst [vmem:[#allocation8 + $0x8] sm:$0xff] %v708_v28 }
 0x21f   :  { %v1033_v31 = vpop.f32.mrb[4].mxu1 }
 0x220   :  { %v729_v33 = vadd.f32 %v1033_v31, %v1443_v19  ;;  %v720_v34 = vpop.f32.mrb[5].mxu1 }
 0x221   :  { %v721_v35 = vadd.f32 %v1443_v19, %v720_v34  ;;  %v1034_v37 = vpop.f32.mrb[6].mxu1 }
 0x222   :  { %837 = vst [vmem:[#allocation8 + $0x30] sm:$0xff] %v729_v33  ;;  %v732_v38 = vadd.f32 %v1034_v37, %v1443_v19  ;;  %v723_v39 = vpop.f32.mrb[7].mxu1 }
 0x223   :  { %835 = vst [vmem:[#allocation8 + $0x20] sm:$0xff] %v721_v35  ;;  %v724_v40 = vadd.f32 %v1443_v19, %v723_v39 }
 0x224   :  { %838 = vst [vmem:[#allocation8 + $0x38] sm:$0xff] %v732_v38 }
 0x225   :  { %836 = vst [vmem:[#allocation8 + $0x28] sm:$0xff] %v724_v40 }
 0x227   :  { %v1037_v41 = vpop.f32.mrb[8].mxu1 }
 0x228   :  { %v745_v24 = vadd.f32 %v1037_v41, %v1443_v19  ;;  %v736_v42 = vpop.f32.mrb[9].mxu1 }
 0x229   :  { %v737_v43 = vadd.f32 %v1443_v19, %v736_v42  ;;  %v1038_v44 = vpop.f32.mrb[10].mxu1 }
 0x22a   :  { %841 = vst [vmem:[#allocation8 + $0x50] sm:$0xff] %v745_v24  ;;  %v748_v36 = vadd.f32 %v1038_v44, %v1443_v19  ;;  %v739_v46 = vpop.f32.mrb[11].mxu1 }
 0x22b   :  { %839 = vst [vmem:[#allocation8 + $0x40] sm:$0xff] %v737_v43  ;;  %v740_v30 = vadd.f32 %v1443_v19, %v739_v46 }
 0x22c   :  { %842 = vst [vmem:[#allocation8 + $0x58] sm:$0xff] %v748_v36 }
 0x22d   :  { %840 = vst [vmem:[#allocation8 + $0x48] sm:$0xff] %v740_v30 }
 0x22f   :  { %v1041_v29 = vpop.f32.mrb[12].mxu1 }
 0x230   :  { %v761_v47 = vadd.f32 %v1041_v29, %v1443_v19  ;;  %v752_v49 = vpop.f32.mrb[13].mxu1 }
 0x231   :  { %v753_v50 = vadd.f32 %v1443_v19, %v752_v49  ;;  %v1042_v51 = vpop.f32.mrb[14].mxu1 }
 0x232   :  { %845 = vst [vmem:[#allocation8 + $0x70] sm:$0xff] %v761_v47  ;;  %v764_v45 = vadd.f32 %v1042_v51, %v1443_v19  ;;  %v755_v48 = vpop.f32.mrb[15].mxu1 }
 0x233   :  { %843 = vst [vmem:[#allocation8 + $0x60] sm:$0xff] %v753_v50  ;;  %v756_v52 = vadd.f32 %v1443_v19, %v755_v48 }
 0x234   :  { %846 = vst [vmem:[#allocation8 + $0x78] sm:$0xff] %v764_v45 }
 0x235   :  { %844 = vst [vmem:[#allocation8 + $0x68] sm:$0xff] %v756_v52 }
 0x237   :  { %v1045_v53 = vpop.f32.mrb[16].mxu1 }
 0x238   :  { %v777_v54 = vadd.f32 %v1045_v53, %v1443_v19  ;;  %v768_v56 = vpop.f32.mrb[17].mxu1 }
 0x239   :  { %v769_v32 = vadd.f32 %v1443_v19, %v768_v56  ;;  %v1046_v57 = vpop.f32.mrb[18].mxu1 }
 0x23a   :  { %849 = vst [vmem:[#allocation8 + $0x90] sm:$0xff] %v777_v54  ;;  %v780_v58 = vadd.f32 %v1046_v57, %v1443_v19  ;;  %v771_v59 = vpop.f32.mrb[19].mxu1 }
 0x23b   :  { %847 = vst [vmem:[#allocation8 + $0x80] sm:$0xff] %v769_v32  ;;  %v772_v62 = vadd.f32 %v1443_v19, %v771_v59 }
 0x23c   :  { %850 = vst [vmem:[#allocation8 + $0x98] sm:$0xff] %v780_v58 }
 0x23d   :  { %848 = vst [vmem:[#allocation8 + $0x88] sm:$0xff] %v772_v62 }
 0x23f   :  { %v1049_v0 = vpop.f32.mrb[20].mxu1 }
 0x240   :  { %v793_v1 = vadd.f32 %v1049_v0, %v1443_v19  ;;  %v784_v2 = vpop.f32.mrb[21].mxu1 }
 0x241   :  { %v785_v5 = vadd.f32 %v1443_v19, %v784_v2  ;;  %v1050_v6 = vpop.f32.mrb[22].mxu1 }
 0x242   :  { %853 = vst [vmem:[#allocation8 + $0xb0] sm:$0xff] %v793_v1  ;;  %v796_v7 = vadd.f32 %v1050_v6, %v1443_v19  ;;  %v787_v8 = vpop.f32.mrb[23].mxu1 }
 0x243   :  { %851 = vst [vmem:[#allocation8 + $0xa0] sm:$0xff] %v785_v5  ;;  %v788_v10 = vadd.f32 %v1443_v19, %v787_v8 }
 0x244   :  { %854 = vst [vmem:[#allocation8 + $0xb8] sm:$0xff] %v796_v7 }
 0x245   :  { %852 = vst [vmem:[#allocation8 + $0xa8] sm:$0xff] %v788_v10 }
 0x247   :  { %v1053_v11 = vpop.f32.mrb[24].mxu1 }
 0x248   :  { %v809_v12 = vadd.f32 %v1053_v11, %v1443_v19  ;;  %v800_v55 = vpop.f32.mrb[25].mxu1 }
 0x249   :  { %v801_v60 = vadd.f32 %v1443_v19, %v800_v55  ;;  %v1054_v13 = vpop.f32.mrb[26].mxu1 }
 0x24a   :  { %857 = vst [vmem:[#allocation8 + $0xd0] sm:$0xff] %v809_v12  ;;  %v812_v14 = vadd.f32 %v1054_v13, %v1443_v19  ;;  %v803_v61 = vpop.f32.mrb[27].mxu1 }
 0x24b   :  { %855 = vst [vmem:[#allocation8 + $0xc0] sm:$0xff] %v801_v60  ;;  %v804_v63 = vadd.f32 %v1443_v19, %v803_v61 }
 0x24c   :  { %858 = vst [vmem:[#allocation8 + $0xd8] sm:$0xff] %v812_v14 }
 0x24d   :  { %856 = vst [vmem:[#allocation8 + $0xc8] sm:$0xff] %v804_v63 }
 0x24f   :  { %v1057_v16 = vpop.f32.mrb[28].mxu1 }
 0x250   :  { %v825_v3 = vadd.f32 %v1057_v16, %v1443_v19  ;;  %v816_v9 = vpop.f32.mrb[29].mxu1 }
 0x251   :  { %v817_v4 = vadd.f32 %v1443_v19, %v816_v9  ;;  %v1058_v18 = vpop.f32.mrb[30].mxu1 }
 0x252   :  { %861 = vst [vmem:[#allocation8 + $0xf0] sm:$0xff] %v825_v3  ;;  %v828_v15 = vadd.f32 %v1058_v18, %v1443_v19  ;;  %v819_v17 = vpop.f32.mrb[31].mxu1 }
 0x253   :  { %859 = vst [vmem:[#allocation8 + $0xe0] sm:$0xff] %v817_v4  ;;  %v820_v20 = vadd.f32 %v1443_v19, %v819_v17 }
 0x254   :  { %862 = vst [vmem:[#allocation8 + $0xf8] sm:$0xff] %v828_v15 }
 0x255   :  { %860 = vst [vmem:[#allocation8 + $0xe8] sm:$0xff] %v820_v20 }
 0x256   :  { %1240 = shalt.err (!%p1237_p0)
}
 0x257   :  { %s1241_s10 = scalar_lea.hbm %s1494_s5, 4096 }
 0x258   :  { %p1242_p1 = scmp.ne.s32.totalorder %s1494_s5, %s1241_s10  ;;  %p1245_p2 = scmp.lt.u32.totalorder %s1241_s10, %s1494_s5 }
 0x25a   :  { %p1247_p3 = pnand %p1245_p2, %p1242_p1 }
 0x25c   :  { %1250 = shalt.err (!%p1247_p3)
}
 0x25d   :  { %s1263_s15 = smov 128   ;;  %s1264_s16 = smov 8  }
 0x25e   :  { %874 = dma.vmem_to_hbm [thread:$0]  %s869_s6, 4096, %s1494_s5, [#allocation4], %s1263_s15, %s1263_s15, %s1264_s16  }
 0x25f   :  { %1255 = dma.done.wait [#allocation4], 4096  }
 0x260   :  { %1256 = vsyncadd [#allocation4], 4294963200 }
 0x261   :  { %878 = vsyncpa [#allocation3], 1 }
 0x262   :  { %879 = vsyncpa [#allocation6], 1 }
 0x263   :  { %880 = vsyncpa [#allocation4], 1 }

</bundles_post_ra>
